<compile_context>
chip_gen: v5e
topology: v5e:2x2
jax: 0.10.0
libtpu: 0.0.40
codegen_flags: <defaults>
</compile_context>

<pallas_src>
import jax
import jax.numpy as jnp
from jax import lax
from jax.experimental import pallas as pl
from jax.experimental.pallas import tpu as pltpu


def _tv_term_kernel(x_ref, y_ref, out_ref):
    # Block shapes: x_ref/y_ref (1, N, TM); out_ref (1, 1, 8, TM).
    x = x_ref[0].astype(jnp.float32)          # (N, TM)
    y = y_ref[0].astype(jnp.float32)          # (N, TM)

    # Finite difference along the sublane (row) axis.
    dx = x[1:, :] - x[:-1, :]
    dy = jnp.abs(y[1:, :] - y[:-1, :])

    num = dx * dx                              # abs(d)**2 -> d*d (VPU only)
    den = jnp.power(dy, 1.2) + 1e-4            # EUP (exp/log)
    # Divide -> approx reciprocal (EUP) * multiply (VPU); outer abs dropped
    # since both numerator and denominator are non-negative.
    term = num * pl.reciprocal(den, approx=True)

    # Lane-dense partial sum: reduce over the sublane (diff) axis only; the
    # full cross-lane reduction happens once, in the JAX wrapper.
    partial = jnp.sum(term, axis=0, keepdims=True)                    # (1, TM)

    rows = lax.broadcasted_iota(jnp.int32, out_ref.shape[2:], 0)      # (8, TM)
    out8 = jnp.where(rows == 0, partial, 0.0)                         # row 0 holds data
    out_ref[...] = out8[None, None]                                   # (1, 1, 8, TM)


def _round_up(v, m):
    return ((v + m - 1) // m) * m


def _tv_term_sum(x2d, y2d, *, max_tile_m=512):
    """sum_b sum( (x2d[b,1:]-x2d[b,:-1])^2 / (|y2d[b,1:]-y2d[b,:-1]|^1.2 + 1e-4) )."""
    assert x2d.shape == y2d.shape
    B, N, M = x2d.shape

    if M <= 128:
        tm = M                                 # full-extent lane block is allowed
    else:
        # ~2 MiB/input tile of f32 keeps (2 inputs x 2 pipeline buffers +
        # temporaries) well inside the default scoped VMEM on v5e/v6e/v7x.
        budget_elems = (2 * 1024 * 1024) // 4
        tm = max(128, (budget_elems // max(N, 1)) // 128 * 128)
        tm = min(max_tile_m, tm, _round_up(M, 128))
        pad = (-M) % tm
        if pad:
            # Zero lanes are exactly sum-neutral: dx = 0 -> 0 / (0 + 1e-4) = 0.
            x2d = jnp.pad(x2d, ((0, 0), (0, 0), (0, pad)))
            y2d = jnp.pad(y2d, ((0, 0), (0, 0), (0, pad)))
            M += pad
    n_m = M // tm

    partials = pl.pallas_call(
        _tv_term_kernel,
        out_shape=jax.ShapeDtypeStruct((B, n_m, 8, tm), jnp.float32),
        grid_spec=pltpu.PrefetchScalarGridSpec(
            num_scalar_prefetch=0,
            grid=(B, n_m),
            in_specs=[
                pl.BlockSpec((1, N, tm), lambda b, m: (b, 0, m)),
                pl.BlockSpec((1, N, tm), lambda b, m: (b, 0, m)),
            ],
            out_specs=pl.BlockSpec((1, 1, 8, tm), lambda b, m: (b, m, 0, 0)),
        ),
        compiler_params=pltpu.CompilerParams(
            # No carried state between grid steps -> fully parallel grid
            # (lets v7x shard the work over both TensorCores).
            dimension_semantics=("parallel", "parallel"),
        ),
    )(x2d, y2d)
    return jnp.sum(partials)


def tv_loss_gradient(x, y, tv_loss_weight=1.0):
    """Pallas implementation of TVLossGradient.forward(x, y).

    x, y: (B, C, H, W) float arrays (NCHW).  Returns a float32 scalar.
    """
    assert x.shape == y.shape
    B, C, H, W = x.shape
    count_h_x = C * (H - 1) * W
    count_w_x = C * H * (W - 1)

    # Lane-dense views: put the non-differenced dims on the lane axis.
    # h-term: diff along H, lanes = C*W.
    xh = jnp.transpose(x, (0, 2, 1, 3)).reshape(B, H, C * W)
    yh = jnp.transpose(y, (0, 2, 1, 3)).reshape(B, H, C * W)
    # w-term: diff along W, lanes = C*H.
    xw = jnp.transpose(x, (0, 3, 1, 2)).reshape(B, W, C * H)
    yw = jnp.transpose(y, (0, 3, 1, 2)).reshape(B, W, C * H)

    h_sum = _tv_term_sum(xh, yh)
    w_sum = _tv_term_sum(xw, yw)

    tv_loss = h_sum / count_h_x + w_sum / count_w_x
    return tv_loss_weight * tv_loss / B


def _reference(x, y, tv_loss_weight=1.0):
    # Pure-JAX reference mirroring the PyTorch module exactly.
    B, C, H, W = x.shape
    count_h_x = C * (H - 1) * W
    count_w_x = C * H * (W - 1)
    h_tv_x = jnp.abs(x[:, :, 1:, :] - x[:, :, :-1, :]) ** 2
    w_tv_x = jnp.abs(x[:, :, :, 1:] - x[:, :, :, :-1]) ** 2
    h_tv_y = jnp.power(jnp.abs(y[:, :, 1:, :] - y[:, :, :-1, :]), 1.2) + 0.0001
    w_tv_y = jnp.power(jnp.abs(y[:, :, :, 1:] - y[:, :, :, :-1]), 1.2) + 0.0001
    loss = (jnp.abs(h_tv_x / h_tv_y).sum() / count_h_x
            + jnp.abs(w_tv_x / w_tv_y).sum() / count_w_x)
    return tv_loss_weight * loss / B


if __name__ == "__main__":
    key = jax.random.PRNGKey(0)
    kx, ky = jax.random.split(key)
    B, C, H, W = 2, 4, 16, 16
    x = jax.random.normal(kx, (B, C, H, W), dtype=jnp.float32)
    y = jax.random.normal(ky, (B, C, H, W), dtype=jnp.float32)

    out = tv_loss_gradient(x, y, tv_loss_weight=1.0)
    out = jax.block_until_ready(out)

    ref = _reference(x, y, tv_loss_weight=1.0)
    # Slightly looser rtol than before to accommodate approx-reciprocal (EUP).
    assert jnp.allclose(out, ref, rtol=2e-3, atol=1e-5), (out, ref)

    print("KERNEL_OK")
</pallas_src>

<mosaic_0001>
module attributes {stable_mosaic.version = 11 : i64} {
  func.func @_tv_term_kernel(%arg0: i32, %arg1: i32, %arg2: memref<1x16x64xf32, #tpu.memory_space<vmem>>, %arg3: memref<1x16x64xf32, #tpu.memory_space<vmem>>, %arg4: memref<1x1x8x64xf32, #tpu.memory_space<vmem>>) attributes {dimension_semantics = [#tpu.dimension_semantics<parallel>, #tpu.dimension_semantics<parallel>], iteration_bounds = array<i64: 2, 1>, scalar_prefetch = 0 : i64, scratch_operands = 0 : i64, tpu.core_type = #tpu.core_type<tc>, window_params = [{transform_indices = @transform_0, window_bounds = array<i64: 1, 16, 64>}, {transform_indices = @transform_1, window_bounds = array<i64: 1, 16, 64>}, {transform_indices = @transform_2, window_bounds = array<i64: 1, 1, 8, 64>}]} {
    %c0 = arith.constant 0 : index
    %c0_0 = arith.constant 0 : index
    %c0_1 = arith.constant 0 : index
    %0 = vector.load %arg2[%c0, %c0_0, %c0_1] : memref<1x16x64xf32, #tpu.memory_space<vmem>>, vector<1x16x64xf32>
    %1 = vector.shape_cast %0 : vector<1x16x64xf32> to vector<16x64xf32>
    %c0_2 = arith.constant 0 : index
    %c0_3 = arith.constant 0 : index
    %c0_4 = arith.constant 0 : index
    %2 = vector.load %arg3[%c0_2, %c0_3, %c0_4] : memref<1x16x64xf32, #tpu.memory_space<vmem>>, vector<1x16x64xf32>
    %3 = vector.shape_cast %2 : vector<1x16x64xf32> to vector<16x64xf32>
    %4 = vector.extract_strided_slice %1 {offsets = [1, 0], sizes = [15, 64], strides = [1, 1]} : vector<16x64xf32> to vector<15x64xf32>
    %5 = vector.extract_strided_slice %1 {offsets = [0, 0], sizes = [15, 64], strides = [1, 1]} : vector<16x64xf32> to vector<15x64xf32>
    %6 = arith.subf %4, %5 : vector<15x64xf32>
    %7 = vector.extract_strided_slice %3 {offsets = [1, 0], sizes = [15, 64], strides = [1, 1]} : vector<16x64xf32> to vector<15x64xf32>
    %8 = vector.extract_strided_slice %3 {offsets = [0, 0], sizes = [15, 64], strides = [1, 1]} : vector<16x64xf32> to vector<15x64xf32>
    %9 = arith.subf %7, %8 : vector<15x64xf32>
    %10 = math.absf %9 : vector<15x64xf32>
    %11 = arith.mulf %6, %6 : vector<15x64xf32>
    %cst = arith.constant 1.200000e+00 : f32
    %12 = vector.broadcast %cst : f32 to vector<15x64xf32>
    %13 = math.powf %10, %12 : vector<15x64xf32>
    %cst_5 = arith.constant 9.99999974E-5 : f32
    %14 = vector.broadcast %cst_5 : f32 to vector<15x64xf32>
    %15 = arith.addf %13, %14 : vector<15x64xf32>
    %16 = tpu.reciprocal %15 {approx = true} : vector<15x64xf32> -> vector<15x64xf32>
    %17 = arith.mulf %11, %16 : vector<15x64xf32>
    %cst_6 = arith.constant dense<0.000000e+00> : vector<64xf32>
    %18 = vector.multi_reduction <add>, %17, %cst_6 [0] : vector<15x64xf32> to vector<64xf32>
    %19 = vector.shape_cast %18 : vector<64xf32> to vector<1x64xf32>
    %20 = tpu.iota {dimensions = array<i32: 0>} : vector<8x64xi32>
    %c0_i32 = arith.constant 0 : i32
    %21 = vector.broadcast %c0_i32 : i32 to vector<8x64xi32>
    %22 = arith.cmpi eq, %20, %21 : vector<8x64xi32>
    %cst_7 = arith.constant 0.000000e+00 : f32
    %23 = vector.shape_cast %19 : vector<1x64xf32> to vector<1x64xf32>
    %24 = vector.broadcast %23 : vector<1x64xf32> to vector<8x64xf32>
    %25 = vector.broadcast %cst_7 : f32 to vector<8x64xf32>
    %26 = arith.select %22, %24, %25 : vector<8x64xi1>, vector<8x64xf32>
    %27 = vector.shape_cast %26 : vector<8x64xf32> to vector<1x1x8x64xf32>
    %c0_8 = arith.constant 0 : index
    %c0_9 = arith.constant 0 : index
    %c0_10 = arith.constant 0 : index
    %c0_11 = arith.constant 0 : index
    %28 = vector.load %arg4[%c0_8, %c0_9, %c0_10, %c0_11] : memref<1x1x8x64xf32, #tpu.memory_space<vmem>>, vector<1x1x8x64xf32>
    tpu.vector_store %arg4[%c0_8, %c0_9, %c0_10, %c0_11], %27 {strides = array<i32>} : memref<1x1x8x64xf32, #tpu.memory_space<vmem>>, vector<1x1x8x64xf32>,
    return
  }
  func.func @transform_0(%arg0: i32, %arg1: i32) -> (i32, i32, i32) {
    %c0_i32 = arith.constant 0 : i32
    %c0_i32_0 = arith.constant 0 : i32
    return %arg0, %c0_i32, %arg1 : i32, i32, i32
  }
  func.func @transform_1(%arg0: i32, %arg1: i32) -> (i32, i32, i32) {
    %c0_i32 = arith.constant 0 : i32
    %c0_i32_0 = arith.constant 0 : i32
    return %arg0, %c0_i32, %arg1 : i32, i32, i32
  }
  func.func @transform_2(%arg0: i32, %arg1: i32) -> (i32, i32, i32, i32) {
    %c0_i32 = arith.constant 0 : i32
    %c0_i32_0 = arith.constant 0 : i32
    %c0_i32_1 = arith.constant 0 : i32
    return %arg0, %arg1, %c0_i32, %c0_i32_0 : i32, i32, i32, i32
  }
}

</mosaic_0001>

<bundles_post_ra>
// kernel: tpu_custom_call.1
= control target key start
LH: loop header
LB: loop body
LE: loop exit
PB: predicated region body
PF: predicated region fallthrough
CT: control target
= control target key end

     0   :  { %7 = vsyncpa [#allocation3], 0  ;;  %s994_s0 = inlined_call_operand.hbm [shape: f32[2,16,64], index: 0, kind: input, shape index: {}]   ;;  %s995_s1 = inlined_call_operand.hbm [shape: f32[2,16,64], index: 1, kind: input, shape index: {}]   ;;  %s996_s2 = inlined_call_operand.hbm [shape: f32[2,1,8,64], index: 2, kind: output, shape index: {}]  }
   0x1   :  { %9 = vsyncpa [#allocation3 + $0x1], 0 }
   0x2   :  { %10 = vsyncpa [#allocation6], 0 }
   0x3   :  { %12 = vsyncpa [#allocation6 + $0x1], 0 }
   0x4   :  { %13 = vsyncpa [#allocation4], 0 }
   0x5   :  { %15 = vsyncpa [#allocation4 + $0x1], 0  ;;  %s810_s9 = smov 0   ;;  %s812_s10 = smov 0  }
   0x6   :  { %s814_s11 = smov 0   ;;  %s816_s12 = smov 0  }
   0x7   :  { %s818_s13 = smov 0   ;;  %s820_s14 = smov 0  }
   0x8 LB: > { %s408_s15 = sadd.s32 4294967295, %s791_s14   ;;  %s409_s16 = sadd.s32 4294967294, %s791_s14   ;;  %s791_s14 = sphi %s820_s14, %s21_s14   ;;  %s787_s13 = sphi %s818_s13, %s1006_s13   ;;  %s783_s12 = sphi %s816_s12, %s1005_s12   ;;  %s779_s11 = sphi %s814_s11, %s1004_s11   ;;  %s775_s10 = sphi %s812_s10, %s1003_s10   ;;  %s771_s9 = sphi %s810_s9, %s1002_s9  }
   0x9   : > { %s33_s17 = sadd.s32 1, %s787_s13  ;;  %s42_s18 = sadd.s32 1, %s779_s11 }
   0xa   : > { %p35_p0 = scmp.ge.s32.totalorder %s33_s17, 2  ;;  %p49_p1 = scmp.ne.s32.totalorder %s779_s11, %s775_s10 }
   0xb   : > { %p50_p2 = scmp.eq.s32.totalorder %s791_s14, 0  ;;  %p55_p3 = scmp.ne.s32.totalorder %s775_s10, %s771_s9 }
   0xc   : > { %s1008_s17 = smov (%p35_p0, %s33_s17), 0  ;;  %p56_p5 = scmp.eq.s32.totalorder %s408_s15, 0 }
   0xd   : > { %p851_p4 = por %p50_p2, %p49_p1  ;;  %s37_s20 = ssub.s32 %s787_s13, %s1008_s17 }
   0xe   : > { %p109_p6 = scmp.eq.s32.totalorder %s408_s15, 1  ;;  %p40_p7 = scmp.eq.s32.totalorder %s37_s20, 0 }
   0xf   : > { %p857_p8 = por %p56_p5, %p55_p3  ;;  %p115_p10 = scmp.eq.s32.totalorder %s409_s16, 1 }
  0x10   : > { %p861_p9 = por %p109_p6, %p49_p1  ;;  %p411_p12 = scmp.ge.s32.totalorder %s791_s14, 2 }
  0x11   : > { %s866_s23 = scalar_select %p40_p7, %s779_s11, %s42_s18  }
  0x12   : > { %p868_p11 = por %p115_p10, %p55_p3  ;;  %p585_p13 = scmp.lt.s32.totalorder %s791_s14, 2 }
  0x13   : > { %s875_s25 = sand.u32 1, %s779_s11   ;;  %s426_s27 = sshll.u32 %s787_s13, 4 }
  0x14   : > { %s412_s26 = sshll.u32 %s875_s25, 4  ;;  %s145_s30 = scalar_lea.hbm %s994_s0, %s426_s27 }
  0x15   : > { %s139_s3 = scalar_lea.vmem [#allocation2], %s412_s26  ;;  %s146_s5 = sshll.u32 %s145_s30, 4  ;;  %s147_s5 = int_to_ptr.hbm [resolvable:$true] %s146_s5 }
  0x16   : > { %s148_s4 = sshll.u32 %s139_s3, 4  ;;  %p884_p0 = pnand %p585_p13, %p851_p4  ;;  %s149_s4 = int_to_ptr.vmem [resolvable:$true] %s148_s4 }
  0x17   : > { %p418_p1 = scmp.ge.s32.totalorder %s791_s14, 1  ;;  %s136_s7 = scalar_lea.sflag [#allocation3], %s875_s25 }
  0x18   : > { %s793_s8 = smov 128   ;;  %s794_s15 = smov 8  }
  0x19   : > { %577 = dma.hbm_to_vmem [thread:$0]  (!%p884_p0), %s147_s5, 256, %s149_s4, %s136_s7, %s793_s8, %s793_s8, %s794_s15  }
  0x1a   : > { %p179_p2 = scmp.lt.s32.totalorder %s791_s14, 3  ;;  %s168_s20 = scalar_lea.hbm %s995_s1, %s426_s27 }
  0x1b   : > { %s169_s28 = sshll.u32 %s168_s20, 4  ;;  %s162_s19 = scalar_lea.vmem [#allocation5], %s412_s26  ;;  %s170_s28 = int_to_ptr.hbm [resolvable:$true] %s169_s28 }
  0x1c   : > { %p180_p3 = pnand %p418_p1, %p179_p2  ;;  %s171_s29 = sshll.u32 %s162_s19, 4  ;;  %s172_s29 = int_to_ptr.vmem [resolvable:$true] %s171_s29 }
  0x1d   : > { %s159_s30 = scalar_lea.sflag [#allocation6], %s875_s25  ;;  %s900_s3 = sand.u32 (!%p180_p3), 1, %s775_s10  }
  0x1e   : > { %580 = dma.hbm_to_vmem [thread:$0]  (!%p884_p0), %s170_s28, 256, %s172_s29, %s159_s30, %s793_s8, %s793_s8, %s794_s15  }
  0x1f   : > { %183 = sbr.rel (%p180_p3) target bundleno = 135 (0x87), region = 28  ;;  %s419_s4 = sshll.u32 (!%p180_p3), %s900_s3, 4 }
  0x20   : > { %s186_s5 = scalar_lea.sflag (!%p180_p3), [#allocation3], %s900_s3  ;;  %s904_s7 = scalar_lea.vmem (!%p180_p3), [#allocation2], %s419_s4 }
  0x24   : > { %758 = dma.done.wait (%p857_p8), %s186_s5, 256  }
  0x25   : > { %760 = vsyncadd (%p857_p8), %s186_s5, 4294967040  ;;  %s196_s25 = scalar_lea.sflag [#allocation6], %s900_s3  ;;  %s199_s26 = scalar_lea.vmem [#allocation5], %s419_s4 }
  0x26   : > { %762 = dma.done.wait (%p857_p8), %s196_s25, 256  }
  0x27   : > { %764 = vsyncadd (%p857_p8), %s196_s25, 4294967040  ;;  %v228_v0 = vld [vmem:[%s199_s26] sm:$0xff]  ;;  %v229_v1 = vld [vmem:[%s199_s26 + $0x8] sm:$0xff]  ;;  %vm232_vm0 = vcmask 1040384   ;;  %s421_s21 = sshll.u32 %s900_s3, 3  ;;  %s423_s27 = sshll.u32 %s783_s12, 3 }
  0x28   : > { %v242_v2 = vrot.slane %v228_v0, 7  ;;  %v243_v3 = vrot.slane %v229_v1, 7  ;;  %s297_s15 = scalar_lea.hbm %s996_s2, %s423_s27  ;;  %s225_s16 = scalar_lea.vmem [#allocation7], %s421_s21 }
  0x29   : > { %s299_s18 = sshll.u32 %s225_s16, 4  ;;  %s301_s20 = sshll.u32 %s297_s15, 4  ;;  %s300_s18 = int_to_ptr.vmem [resolvable:$true] %s299_s18  ;;  %s302_s20 = int_to_ptr.hbm [resolvable:$true] %s301_s20 }
  0x2a   : > { %v247_v4 = vsub.f32 %v228_v0, %v242_v2  ;;  %v244_v5 = vsel %vm232_vm0, %v242_v2, %v243_v3  ;;  %s286_s12 = scalar_lea.sflag [#allocation4], %s900_s3  ;;  %s719_s28 = sshra.s32 %s302_s20, 4  ;;  %s720_s28 = int_to_ptr.hbm [resolvable:$true] %s719_s28 }
  0x2b   : > { %v248_v6 = vsub.f32 %v229_v1, %v244_v5  ;;  %s721_s19 = scalar_lea.hbm %s720_s28, 8  ;;  %s725_s4 = scalar_lea.hbm %s996_s2, 16 }
  0x2c   : > { %v916_v7 = vand.u32 2147483647, %v247_v4  ;;  %p722_p4 = scmp.ne.s32.totalorder %s720_s28, %s721_s19  ;;  %p726_p7 = scmp.lt.s32.totalorder %s720_s28, %s996_s2 }
  0x2d   : > { %v918_v8 = vand.u32 2147483647, %v248_v6  ;;  %p727_p8 = scmp.lt.s32.totalorder %s725_s4, %s721_s19 }
  0x2e   : > { %v438_v9 = vand.u32 8388607, %v916_v7  ;;  %v434_v21 = vand.u32 2139095040, %v916_v7  ;;  %vm472_vm3 = vweird.f32 %v916_v7  ;;  %vm471_vm4 = vcmp.lt.f32.partialorder %v916_v7, 0.0  ;;  %p723_p5 = pnand %p722_p4, %p861_p9 }
  0x2f   : > { %v508_v11 = vand.u32 8388607, %v918_v8  ;;  %v504_v25 = vand.u32 2139095040, %v918_v8  ;;  %vm470_vm5 = vcmp.eq.f32.partialorder %v916_v7, 0.0  ;;  %vm542_vm6 = vweird.f32 %v918_v8  ;;  %p728_p10 = por %p727_p8, %p726_p7 }
  0x30   : > { %v439_v10 = vor.u32 8388608, %v438_v9  ;;  %v435_v29 = vshrl.u32 %v434_v21, 23  ;;  %vm469_vm7 = vcmp.eq.f32.partialorder %v916_v7, 1.0  ;;  %vm541_vm8 = vcmp.lt.f32.partialorder %v918_v8, 0.0  ;;  %v226_v21 = vld [vmem:[%s904_s7] sm:$0xff]  ;;  %p724_p6 = pneg %p723_p5 }
  0x31   : > { %v509_v13 = vor.u32 8388608, %v508_v11  ;;  %v505_v33 = vshrl.u32 %v504_v25, 23  ;;  %vm540_vm9 = vcmp.eq.f32.partialorder %v918_v8, 0.0  ;;  %vm539_vm10 = vcmp.eq.f32.partialorder %v918_v8, 1.0 }
  0x32   : > { %v441_v12 = vand.u32 8388607, %v439_v10  ;;  %v496_v38 = vadd.s32 4294967169, %v435_v29  ;;  %vm479_vm11 = vcmp.lt.f32.partialorder %v916_v7, 0  ;;  %vm480_vm12 = vcmp.eq.f32.partialorder %v916_v7, 0  ;;  %p729_p13 = pnand %p728_p10, %p724_p6 }
  0x33   : > { %v511_v15 = vand.u32 8388607, %v509_v13  ;;  %v566_v43 = vadd.s32 4294967169, %v505_v33  ;;  %vm483_vm13 = vcmp.eq.f32.partialorder %v916_v7, 2139095040  ;;  %vm549_vm14 = vcmp.lt.f32.partialorder %v918_v8, 0 }
  0x34   : > { %v442_v14 = vor.u32 1065353216, %v441_v12  ;;  %v446_v48 = vadd.s32 1, %v496_v38  ;;  %vm491_vm15 = vcmp.ne.f32.partialorder %v916_v7, %v916_v7 }
  0x35   : > { %v512_v17 = vor.u32 1065353216, %v511_v15  ;;  %v516_v53 = vadd.s32 1, %v566_v43 }
  0x36   : > { %vm443_vm1 = vcmp.ge.f32.partialorder %v442_v14, 1.4142135  ;;  %v444_v16 = vmul.f32 0.5, %v442_v14 }
  0x37   : > { %vm513_vm2 = vcmp.ge.f32.partialorder %v512_v17, 1.4142135  ;;  %v514_v19 = vmul.f32 0.5, %v512_v17  ;;  %v447_v58 = vsel %vm443_vm1, %v446_v48, %v496_v38 }
  0x38   : > { %v445_v18 = vsel %vm443_vm1, %v444_v16, %v442_v14  ;;  %v517_v62 = vsel %vm513_vm2, %v516_v53, %v566_v43  ;;  %v467_v1 = vcvt.s32.f32 %v447_v58  ;;  %vm550_vm1 = vcmp.eq.f32.partialorder %v918_v8, 0 }
  0x39   : > { %v497_v20 = vadd.f32 -1.0, %v445_v18  ;;  %v515_v22 = vsel %vm513_vm2, %v514_v19, %v512_v17  ;;  %v537_v5 = vcvt.s32.f32 %v517_v62  ;;  %vm481_vm2 = vcmp.eq.f32.partialorder %v916_v7, 1065353216 }
  0x3a   : > { %v567_v24 = vadd.f32 -1.0, %v515_v22  ;;  %v227_v22 = vld [vmem:[%s904_s7 + $0x8] sm:$0xff]  ;;  %v280_v53 = vlaneseq }
  0x3b   : > { %v449_v23 = vmul.f32 %v497_v20, %v497_v20 }
  0x3c   : > { %v519_v28 = vmul.f32 %v567_v24, %v567_v24 }
  0x3d   : > { %v450_v26 = vmul.f32 0.12621109, %v449_v23  ;;  %v452_v27 = vmul.f32 -0.20706727, %v449_v23 }
  0x3e   : > { %v520_v32 = vmul.f32 0.12621109, %v519_v28  ;;  %v522_v34 = vmul.f32 -0.20706727, %v519_v28 }
  0x3f   : > { %v451_v30 = vadd.f32 0.21545328, %v450_v26  ;;  %v453_v31 = vadd.f32 -0.23896284, %v452_v27  ;;  %v234_v27 = vrot.slane %v227_v22, 7 }
  0x40   : > { %v521_v37 = vadd.f32 0.21545328, %v520_v32  ;;  %v523_v39 = vadd.f32 -0.23896284, %v522_v34 }
  0x41   : > { %v454_v35 = vmul.f32 %v451_v30, %v449_v23  ;;  %v456_v36 = vmul.f32 %v453_v31, %v449_v23 }
  0x42   : > { %v524_v42 = vmul.f32 %v521_v37, %v519_v28  ;;  %v526_v44 = vmul.f32 %v523_v39, %v519_v28 }
  0x43   : > { %v455_v40 = vadd.f32 0.28795174, %v454_v35  ;;  %v457_v41 = vadd.f32 -0.3607037, %v456_v36 }
  0x44   : > { %v525_v47 = vadd.f32 0.28795174, %v524_v42  ;;  %v527_v49 = vadd.f32 -0.3607037, %v526_v44 }
  0x45   : > { %v458_v45 = vmul.f32 %v455_v40, %v449_v23  ;;  %v460_v46 = vmul.f32 %v457_v41, %v449_v23 }
  0x46   : > { %v528_v52 = vmul.f32 %v525_v47, %v519_v28  ;;  %v530_v54 = vmul.f32 %v527_v49, %v519_v28 }
  0x47   : > { %v459_v50 = vadd.f32 0.48090908, %v458_v45  ;;  %v461_v51 = vadd.f32 -0.72134733, %v460_v46 }
  0x48   : > { %v529_v57 = vadd.f32 0.48090908, %v528_v52  ;;  %v531_v59 = vadd.f32 -0.72134733, %v530_v54 }
  0x49   : > { %v462_v55 = vmul.f32 %v459_v50, %v449_v23  ;;  %v464_v56 = vmul.f32 %v497_v20, %v461_v51 }
  0x4a   : > { %v532_v61 = vmul.f32 %v529_v57, %v519_v28  ;;  %v534_v63 = vmul.f32 %v567_v24, %v531_v59 }
  0x4b   : > { %v463_v60 = vadd.f32 1.442695, %v462_v55 }
  0x4c   : > { %v533_v2 = vadd.f32 1.442695, %v532_v61 }
  0x4d   : > { %v465_v0 = vadd.f32 %v464_v56, %v463_v60  ;;  %v281_v56 = vshrl.u32 %v280_v53, 7 }
  0x4e   : > { %v535_v4 = vadd.f32 %v534_v63, %v533_v2 }
  0x4f   : > { %v466_v3 = vmul.f32 %v497_v20, %v465_v0 }
  0x50   : > { %v536_v9 = vmul.f32 %v567_v24, %v535_v4  ;;  %v233_v24 = vrot.slane %v226_v21, 7 }
  0x51   : > { %v468_v6 = vadd.f32 %v467_v1, %v466_v3 }
  0x52   : > { %v538_v11 = vadd.f32 %v537_v5, %v536_v9  ;;  %v235_v35 = vsel %vm232_vm0, %v233_v24, %v234_v27  ;;  %v238_v38 = vsub.f32 %v226_v21, %v233_v24  ;;  %vm269_vm0 = vcmask 523264  }
  0x53   : > { %v473_v10 = vsel %vm472_vm3, %v916_v7, %v468_v6  ;;  %vm553_vm3 = vcmp.eq.f32.partialorder %v918_v8, 2139095040  ;;  %v239_v40 = vsub.f32 %v227_v22, %v235_v35 }
  0x54   : > { %v474_v12 = vsel %vm471_vm4, nan, %v473_v10  ;;  %v543_v14 = vsel %vm542_vm6, %v918_v8, %v538_v11  ;;  %vm561_vm4 = vcmp.ne.f32.partialorder %v918_v8, %v918_v8  ;;  %v251_v41 = vmul.f32 %v238_v38, %v238_v38 }
  0x55   : > { %v475_v13 = vsel %vm470_vm5, -inf, %v474_v12  ;;  %v544_v16 = vsel %vm541_vm8, nan, %v543_v14  ;;  %vm551_vm5 = vcmp.eq.f32.partialorder %v918_v8, 1065353216  ;;  %v252_v42 = vmul.f32 %v239_v40, %v239_v40 }
  0x56   : > { %v476_v15 = vsel %vm469_vm7, 0.0, %v475_v13  ;;  %v545_v18 = vsel %vm540_vm9, -inf, %v544_v16  ;;  %vm263_vm6 = vcmask 1046528   ;;  %vm271_vm7 = vcmask 522240  }
  0x57   : > { %v477_v17 = vmul.f32 1.2, %v476_v15  ;;  %v546_v19 = vsel %vm539_vm10, 0.0, %v545_v18  ;;  %vm282_vm8 = vcmp.eq.s32.totalorder %v281_v56, 0 }
  0x58   : > { %v547_v20 = vmul.f32 1.2, %v546_v19 }
  0x59   : > { %637 = vpow2.f32 %v477_v17 }
  0x5a   : > { %639 = vpow2.f32 %v547_v20 }
  0x5f   : > { %v638_v23 = vpop.eup %637 }
  0x60   : > { %v484_v25 = vsel %vm479_vm11, 2143289344, %v638_v23  ;;  %v640_v26 = vpop.eup %639 }
  0x61   : > { %v485_v28 = vsel %vm480_vm12, 0, %v484_v25  ;;  %v554_v30 = vsel %vm549_vm14, 2143289344, %v640_v26 }
  0x62   : > { %v490_v29 = vsel %vm483_vm13, 2139095040, %v485_v28  ;;  %v555_v32 = vsel %vm550_vm1, 0, %v554_v30 }
  0x63   : > { %v494_v31 = vsel %vm491_vm15, 2143289344, %v490_v29  ;;  %v560_v34 = vsel %vm553_vm3, 2139095040, %v555_v32 }
  0x64   : > { %v495_v33 = vsel %vm481_vm2, 1065353216, %v494_v31  ;;  %v564_v36 = vsel %vm561_vm4, 2143289344, %v560_v34 }
  0x65   : > { %v255_v37 = vadd.f32 0.0001, %v495_v33  ;;  %v565_v7 = vsel %vm551_vm5, 1065353216, %v564_v36 }
  0x66   : > { %v256_v39 = vadd.f32 0.0001, %v565_v7 }
  0x67   : > { %641 = vrcp.f32 %v255_v37 }
  0x68   : > { %643 = vrcp.f32 %v256_v39 }
  0x6d   : > { %v642_v43 = vpop.eup %641 }
  0x6e   : > { %v259_v44 = vmul.f32 %v642_v43, %v251_v41  ;;  %v644_v8 = vpop.eup %643 }
  0x6f   : > { %v260_v45 = vmul.f32 %v644_v8, %v252_v42 }
  0x70   : > { %v264_v46 = vrot.slane %v259_v44, 1 }
  0x71   : > { %v265_v47 = vrot.slane %v260_v45, 1 }
  0x73   : > { %v266_v48 = vsel %vm263_vm6, %v264_v46, %v265_v47  ;;  %v272_v49 = vsel %vm271_vm7, %v265_v47, 0.0 }
  0x74   : > { %v270_v50 = vsel %vm269_vm0, %v266_v48, 0.0 }
  0x75   : > { %v273_v51 = vadd.f32 %v272_v49, %v270_v50 }
  0x77   : > { %v274_v52 = vrot.slane %v273_v51, 4 }
  0x79   : > { %v275_v54 = vadd.f32 %v274_v52, %v273_v51 }
  0x7b   : > { %v276_v55 = vrot.slane %v275_v54, 2 }
  0x7d   : > { %v277_v57 = vadd.f32 %v276_v55, %v275_v54 }
  0x7f   : > { %v278_v58 = vrot.slane %v277_v57, 1 }
  0x81   : > { %v279_v59 = vadd.f32 %v278_v58, %v277_v57 }
  0x83   : > { %v283_v60 = vsel %vm282_vm8, %v279_v59, 0.0 }
  0x84   : > { %284 = vst.msk [vmem:[%s225_s16] sm:$0xff] %vm269_vm0, %v283_v60 }
  0x85   : > { %732 = shalt.err (!%p729_p13)
}
  0x86   : > { %572 = dma.vmem_to_hbm [thread:$0]  (%p861_p9), %s300_s18, 128, %s302_s20, %s286_s12  }
  0x87 PF: > { %s313_s3 = sand.u32 1, %s771_s9   ;;  %p582_p0 = pnand %p411_p12, %p868_p11 }
  0x88   : > { %s314_s25 = scalar_lea.sflag [#allocation4], %s313_s3 }
  0x89   : > { %p583_p1 = pneg %p582_p0 }
  0x8b   : > { %766 = dma.done.wait (%p583_p1), %s314_s25, 128  }
  0x8c   : > { %768 = vsyncadd (%p583_p1), %s314_s25, 4294967168  ;;  %s21_s14 = sadd.s32 1, %s791_s14   ;;  %s1002_s9 = smov %s775_s10 }
  0x8d   : > { %p18_p2 = scmp.ge.s32.totalorder %s21_s14, 4   ;;  %s1003_s10 = smov %s779_s11 }
  0x8e   : > { %s1004_s11 = smov %s866_s23  ;;  %s1005_s12 = smov %s787_s13 }
  0x8f   : > { %s1006_s13 = smov %s1008_s17  ;;  %20 = sbr.rel (!%p18_p2) target bundleno = 8 (0x8), region = 86 }
  0x94   :  { %320 = vsyncpa [#allocation3], 1 }
  0x95   :  { %322 = vsyncpa [#allocation3 + $0x1], 1 }
  0x96   :  { %323 = vsyncpa [#allocation6], 1 }
  0x97   :  { %325 = vsyncpa [#allocation6 + $0x1], 1 }
  0x98   :  { %326 = vsyncpa [#allocation4], 1 }
  0x99   :  { %328 = vsyncpa [#allocation4 + $0x1], 1 }

</bundles_post_ra>
